<compile_context>
chip_gen: v6e
topology: v6e:2x2x1
jax: 0.10.0
libtpu: 0.0.40
codegen_flags: <defaults>
</compile_context>

<pallas_src>
import functools
import math

import jax
import jax.numpy as jnp
from jax import lax
from jax.experimental import pallas as pl
from jax.experimental.pallas import tpu as pltpu


def _sdpa_kernel(q_ref, k_ref, v_ref, ctx_ref, attn_ref, *, scale, compute_dtype):
    # Blocks: q (G, TQ, D), k/v (G, S, D), ctx (G, TQ, D), attn (G, TQ, S).
    q = (q_ref[...] * scale).astype(compute_dtype)   # fold 1/sqrt(d_k) into Q
    k = k_ref[...].astype(compute_dtype)

    # scores = Q @ K^T : contract the last dims directly (no XLU transpose).
    scores = lax.dot_general(
        q, k,
        dimension_numbers=(((2,), (2,)), ((0,), (0,))),
        preferred_element_type=jnp.float32,
    )                                                 # (G, TQ, S) f32

    # Numerically stable softmax over the key axis, all math in f32.
    m = jnp.max(scores, axis=-1, keepdims=True)
    p = jnp.exp(scores - m)
    denom = jnp.sum(p, axis=-1, keepdims=True)

    # Exact normalization for the *returned* probabilities (rows sum to 1);
    # store into attn_ref first so no third (G, TQ, S) f32 temp stays live.
    attn_ref[...] = (p / denom).astype(attn_ref.dtype)

    # context = attn @ V, re-reading the stored probabilities.
    attn = attn_ref[...].astype(compute_dtype)
    v = v_ref[...].astype(compute_dtype)
    ctx = lax.dot_general(
        attn, v,
        dimension_numbers=(((2,), (1,)), ((0,), (0,))),
        preferred_element_type=jnp.float32,
    )                                                 # (G, TQ, D) f32
    ctx_ref[...] = ctx.astype(ctx_ref.dtype)


def _round_up(x, m):
    return ((x + m - 1) // m) * m


def _vmem_capacity_bytes():
    """Physical VMEM per TensorCore; query the device, fall back to heuristics."""
    try:
        return int(pltpu.get_tpu_info().vmem_capacity_bytes)
    except Exception:  # pragma: no cover - info API unavailable
        pass
    try:
        kind = jax.devices()[0].device_kind.lower()
    except Exception:  # pragma: no cover
        kind = ""
    if "v7" in kind:
        return 64 * 1024 * 1024
    return 128 * 1024 * 1024


def _block_bytes(TQ, S, D, itemsize, kv_buffers):
    """Per-head VMEM footprint of one grid step (pipelined blocks + temps)."""
    blocks = 2 * TQ * D * itemsize                  # Q tile (double-buffered)
    blocks += kv_buffers * 2 * S * D * itemsize     # K + V resident blocks
    blocks += 2 * TQ * D * itemsize                 # context tile
    blocks += 2 * TQ * S * itemsize                 # attn tile
    temps = 2 * TQ * S * 4                          # f32 scores + exp(scores)
    temps += TQ * S * itemsize                      # attn matmul-LHS copy
    temps += TQ * D * 4                             # f32 context accumulator
    return blocks + temps


def _pick_head_group(BH, S, S_q, TQ, n_q_tiles, per_head_bytes, budget):
    """Largest divisor of BH that fits the VMEM budget and occupancy caps."""
    if TQ < S_q or BH == 1:
        return 1       # long sequences: large TQ already amortizes step overhead
    best = 1
    for cand in range(2, BH + 1):
        if BH % cand:
            continue
        if cand * per_head_bytes > budget:
            continue
        if cand * TQ * S * 4 > 16 * 1024 * 1024:    # cap f32 (G,TQ,S) intermediates
            continue
        if n_q_tiles == 1 and BH >= 2 and BH // cand < 2:
            continue   # keep >= 2 parallel grid steps so both v7x TCs get work
        best = cand
    return best


def scaled_dot_product_attention(Q, K, V, attn_mask=None, *, compute_dtype=None):
    """Pallas equivalent of ScaledDotProductAttention.forward (mask=None path).

    Q, K, V: [B, H, S, d_k] arrays.
    Returns (context [B, H, S, d_k], attn [B, H, S, S]).
    """
    # TODO(synk): the attn_mask branch calls an externally-defined masked_softmax
    # in the reference module; only the attn_mask=None branch is implemented.
    assert attn_mask is None

    B, H, S, D = Q.shape
    BH = B * H
    scale = 1.0 / math.sqrt(D)
    out_dtype = Q.dtype
    compute_dtype = jnp.dtype(out_dtype if compute_dtype is None else compute_dtype)
    itemsize = jnp.dtype(Q.dtype).itemsize

    vmem_cap = _vmem_capacity_bytes()
    vmem_limit = (vmem_cap * 3) // 4                # scoped-VMEM limit with headroom
    budget = int(vmem_limit * 0.85)                 # block-selection budget (+ scratch margin)

    tq_target = 512 if vmem_cap >= 96 * 1024 * 1024 else 256
    sub = 8 if itemsize >= 4 else (16 if itemsize == 2 else 32)   # sublane multiple

    can_single_buffer_kv = hasattr(pl, "Buffered")
    kv_buffers = 1 if can_single_buffer_kv else 2

    # Pick the query tile first; pad the query axis for non-divisor S.
    TQ = _round_up(min(tq_target, _round_up(S, sub)), sub)
    while TQ > 128 and _block_bytes(TQ, S, D, itemsize, kv_buffers) > budget:
        TQ = max(128, _round_up(TQ // 2, sub))
    # TODO(synk): if even TQ=128 overflows the budget (very long context on v7x),
    # key-axis streaming of K/V via pltpu.emit_pipeline would be the next step.
    S_q = _round_up(S, TQ)
    n_q_tiles = S_q // TQ

    per_head = _block_bytes(TQ, S, D, itemsize, kv_buffers)
    G = _pick_head_group(BH, S, S_q, TQ, n_q_tiles, per_head, budget)

    q = Q.reshape(BH, S, D)
    k = K.reshape(BH, S, D)
    v = V.reshape(BH, S, D)
    if S_q != S:
        q = jnp.pad(q, ((0, 0), (0, S_q - S), (0, 0)))   # zero-pad query rows only

    kernel = functools.partial(_sdpa_kernel, scale=scale, compute_dtype=compute_dtype)

    def _run(single_buffer_kv):
        kv_kwargs = {}
        if single_buffer_kv:
            # K/V block index only changes on the head axis -> single buffer.
            kv_kwargs = dict(pipeline_mode=pl.Buffered(1))
        return pl.pallas_call(
            kernel,
            out_shape=(
                jax.ShapeDtypeStruct((BH, S_q, D), out_dtype),
                jax.ShapeDtypeStruct((BH, S_q, S), out_dtype),
            ),
            grid_spec=pltpu.PrefetchScalarGridSpec(
                num_scalar_prefetch=0,
                grid=(BH // G, n_q_tiles),
                in_specs=[
                    pl.BlockSpec((G, TQ, D), lambda i, j: (i, j, 0)),              # Q tile
                    pl.BlockSpec((G, S, D), lambda i, j: (i, 0, 0), **kv_kwargs),  # K resident
                    pl.BlockSpec((G, S, D), lambda i, j: (i, 0, 0), **kv_kwargs),  # V resident
                ],
                out_specs=[
                    pl.BlockSpec((G, TQ, D), lambda i, j: (i, j, 0)),              # context tile
                    pl.BlockSpec((G, TQ, S), lambda i, j: (i, j, 0)),              # attn tile
                ],
            ),
            compiler_params=pltpu.CompilerParams(
                dimension_semantics=("parallel", "parallel"),
                vmem_limit_bytes=vmem_limit,
            ),
        )(q, k, v)

    if can_single_buffer_kv:
        try:
            ctx, attn = _run(True)
        except Exception:
            # Older jax without single-buffer pipeline_mode: default double buffering.
            ctx, attn = _run(False)
    else:
        ctx, attn = _run(False)

    if S_q != S:
        ctx = ctx[:, :S, :]
        attn = attn[:, :S, :]
    return ctx.reshape(B, H, S, D), attn.reshape(B, H, S, S)


if __name__ == "__main__":
    def _reference(Q, K, V):
        scores = jnp.einsum("bhqd,bhkd->bhqk", Q, K) / jnp.sqrt(jnp.float32(Q.shape[-1]))
        attn = jax.nn.softmax(scores, axis=-1)
        ctx = jnp.einsum("bhqk,bhkd->bhqd", attn, V)
        return ctx, attn

    # Case 1: small, tile-friendly shapes.
    B, H, S, D = 2, 2, 8, 32  # batch, heads, seq, d_k
    kq, kk, kv = jax.random.split(jax.random.PRNGKey(0), 3)
    Q = jax.random.normal(kq, (B, H, S, D), dtype=jnp.float32)
    K = jax.random.normal(kk, (B, H, S, D), dtype=jnp.float32)
    V = jax.random.normal(kv, (B, H, S, D), dtype=jnp.float32)

    context, attn = scaled_dot_product_attention(Q, K, V)
    jax.block_until_ready((context, attn))

    ctx_ref, attn_ref = _reference(Q, K, V)
    assert jnp.allclose(attn, attn_ref, atol=5e-3), float(jnp.max(jnp.abs(attn - attn_ref)))
    assert jnp.allclose(context, ctx_ref, atol=5e-3), float(jnp.max(jnp.abs(context - ctx_ref)))

    # Case 2: sequence length that does not divide the query tile
    # (exercises the padded query axis path).
    B2, H2, S2, D2 = 2, 2, 10, 32
    kq2, kk2, kv2 = jax.random.split(jax.random.PRNGKey(1), 3)
    Q2 = jax.random.normal(kq2, (B2, H2, S2, D2), dtype=jnp.float32)
    K2 = jax.random.normal(kk2, (B2, H2, S2, D2), dtype=jnp.float32)
    V2 = jax.random.normal(kv2, (B2, H2, S2, D2), dtype=jnp.float32)

    context2, attn2 = scaled_dot_product_attention(Q2, K2, V2)
    jax.block_until_ready((context2, attn2))

    ctx_ref2, attn_ref2 = _reference(Q2, K2, V2)
    assert jnp.allclose(attn2, attn_ref2, atol=5e-3), float(jnp.max(jnp.abs(attn2 - attn_ref2)))
    assert jnp.allclose(context2, ctx_ref2, atol=5e-3), float(jnp.max(jnp.abs(context2 - ctx_ref2)))

    print("KERNEL_OK")
</pallas_src>

<mosaic_0001>
module attributes {stable_mosaic.version = 11 : i64} {
  func.func @_sdpa_kernel(%arg0: i32, %arg1: i32, %arg2: memref<2x8x32xf32, #tpu.memory_space<vmem>>, %arg3: memref<2x8x32xf32, #tpu.memory_space<vmem>>, %arg4: memref<2x8x32xf32, #tpu.memory_space<vmem>>, %arg5: memref<2x8x32xf32, #tpu.memory_space<vmem>>, %arg6: memref<2x8x8xf32, #tpu.memory_space<vmem>>) attributes {dimension_semantics = [#tpu.dimension_semantics<parallel>, #tpu.dimension_semantics<parallel>], iteration_bounds = array<i64: 2, 1>, scalar_prefetch = 0 : i64, scratch_operands = 0 : i64, tpu.core_type = #tpu.core_type<tc>, window_params = [{transform_indices = @transform_0, window_bounds = array<i64: 2, 8, 32>}, {pipeline_mode = #tpu.pipeline_mode<synchronous>, transform_indices = @transform_1, window_bounds = array<i64: 2, 8, 32>}, {pipeline_mode = #tpu.pipeline_mode<synchronous>, transform_indices = @transform_2, window_bounds = array<i64: 2, 8, 32>}, {transform_indices = @transform_3, window_bounds = array<i64: 2, 8, 32>}, {transform_indices = @transform_4, window_bounds = array<i64: 2, 8, 8>}]} {
    %c0 = arith.constant 0 : index
    %c0_0 = arith.constant 0 : index
    %c0_1 = arith.constant 0 : index
    %0 = vector.load %arg2[%c0, %c0_0, %c0_1] : memref<2x8x32xf32, #tpu.memory_space<vmem>>, vector<2x8x32xf32>
    %cst = arith.constant 0.176776692 : f32
    %1 = vector.broadcast %cst : f32 to vector<2x8x32xf32>
    %2 = arith.mulf %0, %1 : vector<2x8x32xf32>
    %c0_2 = arith.constant 0 : index
    %c0_3 = arith.constant 0 : index
    %c0_4 = arith.constant 0 : index
    %3 = vector.load %arg3[%c0_2, %c0_3, %c0_4] : memref<2x8x32xf32, #tpu.memory_space<vmem>>, vector<2x8x32xf32>
    %cst_5 = arith.constant dense<0.000000e+00> : vector<2x8x8xf32>
    %4 = tpu.matmul %2, %3, %cst_5 {dimension_numbers = #tpu.dot_dimension_numbers<[2], [2], [1], [1], [0, 0, 0, 1, 1, 1], [0], [0]>} : vector<2x8x32xf32>, vector<2x8x32xf32>, vector<2x8x8xf32> -> vector<2x8x8xf32>
    %cst_6 = arith.constant dense<0xFF800000> : vector<2x8xf32>
    %5 = vector.multi_reduction <maximumf>, %4, %cst_6 [2] : vector<2x8x8xf32> to vector<2x8xf32>
    %6 = vector.shape_cast %5 : vector<2x8xf32> to vector<2x8x1xf32>
    %7 = vector.broadcast %6 : vector<2x8x1xf32> to vector<2x8x8xf32>
    %8 = arith.subf %4, %7 : vector<2x8x8xf32>
    %9 = math.exp %8 : vector<2x8x8xf32>
    %cst_7 = arith.constant dense<0.000000e+00> : vector<2x8xf32>
    %10 = vector.multi_reduction <add>, %9, %cst_7 [2] : vector<2x8x8xf32> to vector<2x8xf32>
    %11 = vector.shape_cast %10 : vector<2x8xf32> to vector<2x8x1xf32>
    %12 = vector.broadcast %11 : vector<2x8x1xf32> to vector<2x8x8xf32>
    %13 = arith.divf %9, %12 : vector<2x8x8xf32>
    %c0_8 = arith.constant 0 : index
    %c0_9 = arith.constant 0 : index
    %c0_10 = arith.constant 0 : index
    %14 = vector.load %arg6[%c0_8, %c0_9, %c0_10] : memref<2x8x8xf32, #tpu.memory_space<vmem>>, vector<2x8x8xf32>
    tpu.vector_store %arg6[%c0_8, %c0_9, %c0_10], %13 {strides = array<i32>} : memref<2x8x8xf32, #tpu.memory_space<vmem>>, vector<2x8x8xf32>,
    %c0_11 = arith.constant 0 : index
    %c0_12 = arith.constant 0 : index
    %c0_13 = arith.constant 0 : index
    %15 = vector.load %arg6[%c0_11, %c0_12, %c0_13] : memref<2x8x8xf32, #tpu.memory_space<vmem>>, vector<2x8x8xf32>
    %c0_14 = arith.constant 0 : index
    %c0_15 = arith.constant 0 : index
    %c0_16 = arith.constant 0 : index
    %16 = vector.load %arg4[%c0_14, %c0_15, %c0_16] : memref<2x8x32xf32, #tpu.memory_space<vmem>>, vector<2x8x32xf32>
    %cst_17 = arith.constant dense<0.000000e+00> : vector<2x8x32xf32>
    %17 = tpu.matmul %15, %16, %cst_17 {dimension_numbers = #tpu.dot_dimension_numbers<[2], [1], [1], [2], [0, 0, 0, 1, 1, 2], [0], [0]>} : vector<2x8x8xf32>, vector<2x8x32xf32>, vector<2x8x32xf32> -> vector<2x8x32xf32>
    %c0_18 = arith.constant 0 : index
    %c0_19 = arith.constant 0 : index
    %c0_20 = arith.constant 0 : index
    %18 = vector.load %arg5[%c0_18, %c0_19, %c0_20] : memref<2x8x32xf32, #tpu.memory_space<vmem>>, vector<2x8x32xf32>
    tpu.vector_store %arg5[%c0_18, %c0_19, %c0_20], %17 {strides = array<i32>} : memref<2x8x32xf32, #tpu.memory_space<vmem>>, vector<2x8x32xf32>,
    return
  }
  func.func @transform_0(%arg0: i32, %arg1: i32) -> (i32, i32, i32) {
    %c0_i32 = arith.constant 0 : i32
    %c0_i32_0 = arith.constant 0 : i32
    return %arg0, %arg1, %c0_i32 : i32, i32, i32
  }
  func.func @transform_1(%arg0: i32, %arg1: i32) -> (i32, i32, i32) {
    %c0_i32 = arith.constant 0 : i32
    %c0_i32_0 = arith.constant 0 : i32
    %c0_i32_1 = arith.constant 0 : i32
    return %arg0, %c0_i32, %c0_i32_0 : i32, i32, i32
  }
  func.func @transform_2(%arg0: i32, %arg1: i32) -> (i32, i32, i32) {
    %c0_i32 = arith.constant 0 : i32
    %c0_i32_0 = arith.constant 0 : i32
    %c0_i32_1 = arith.constant 0 : i32
    return %arg0, %c0_i32, %c0_i32_0 : i32, i32, i32
  }
  func.func @transform_3(%arg0: i32, %arg1: i32) -> (i32, i32, i32) {
    %c0_i32 = arith.constant 0 : i32
    %c0_i32_0 = arith.constant 0 : i32
    return %arg0, %arg1, %c0_i32 : i32, i32, i32
  }
  func.func @transform_4(%arg0: i32, %arg1: i32) -> (i32, i32, i32) {
    %c0_i32 = arith.constant 0 : i32
    %c0_i32_0 = arith.constant 0 : i32
    return %arg0, %arg1, %c0_i32 : i32, i32, i32
  }
}

module attributes {stable_mosaic.version = 11 : i64} {
  func.func @_sdpa_kernel(%arg0: i32, %arg1: i32, %arg2: memref<2x8x32xf32, #tpu.memory_space<vmem>>, %arg3: memref<2x8x32xf32, #tpu.memory_space<vmem>>, %arg4: memref<2x8x32xf32, #tpu.memory_space<vmem>>, %arg5: memref<2x8x32xf32, #tpu.memory_space<vmem>>, %arg6: memref<2x8x8xf32, #tpu.memory_space<vmem>>) attributes {dimension_semantics = [#tpu.dimension_semantics<parallel>, #tpu.dimension_semantics<parallel>], iteration_bounds = array<i64: 2, 1>, scalar_prefetch = 0 : i64, scratch_operands = 0 : i64, tpu.core_type = #tpu.core_type<tc>, window_params = [{transform_indices = @transform_0, window_bounds = array<i64: 2, 8, 32>}, {transform_indices = @transform_1, window_bounds = array<i64: 2, 8, 32>}, {transform_indices = @transform_2, window_bounds = array<i64: 2, 8, 32>}, {transform_indices = @transform_3, window_bounds = array<i64: 2, 8, 32>}, {transform_indices = @transform_4, window_bounds = array<i64: 2, 8, 8>}]} {
    %c0 = arith.constant 0 : index
    %c0_0 = arith.constant 0 : index
    %c0_1 = arith.constant 0 : index
    %0 = vector.load %arg2[%c0, %c0_0, %c0_1] : memref<2x8x32xf32, #tpu.memory_space<vmem>>, vector<2x8x32xf32>
    %cst = arith.constant 0.176776692 : f32
    %1 = vector.broadcast %cst : f32 to vector<2x8x32xf32>
    %2 = arith.mulf %0, %1 : vector<2x8x32xf32>
    %c0_2 = arith.constant 0 : index
    %c0_3 = arith.constant 0 : index
    %c0_4 = arith.constant 0 : index
    %3 = vector.load %arg3[%c0_2, %c0_3, %c0_4] : memref<2x8x32xf32, #tpu.memory_space<vmem>>, vector<2x8x32xf32>
    %cst_5 = arith.constant dense<0.000000e+00> : vector<2x8x8xf32>
    %4 = tpu.matmul %2, %3, %cst_5 {dimension_numbers = #tpu.dot_dimension_numbers<[2], [2], [1], [1], [0, 0, 0, 1, 1, 1], [0], [0]>} : vector<2x8x32xf32>, vector<2x8x32xf32>, vector<2x8x8xf32> -> vector<2x8x8xf32>
    %cst_6 = arith.constant dense<0xFF800000> : vector<2x8xf32>
    %5 = vector.multi_reduction <maximumf>, %4, %cst_6 [2] : vector<2x8x8xf32> to vector<2x8xf32>
    %6 = vector.shape_cast %5 : vector<2x8xf32> to vector<2x8x1xf32>
    %7 = vector.broadcast %6 : vector<2x8x1xf32> to vector<2x8x8xf32>
    %8 = arith.subf %4, %7 : vector<2x8x8xf32>
    %9 = math.exp %8 : vector<2x8x8xf32>
    %cst_7 = arith.constant dense<0.000000e+00> : vector<2x8xf32>
    %10 = vector.multi_reduction <add>, %9, %cst_7 [2] : vector<2x8x8xf32> to vector<2x8xf32>
    %11 = vector.shape_cast %10 : vector<2x8xf32> to vector<2x8x1xf32>
    %12 = vector.broadcast %11 : vector<2x8x1xf32> to vector<2x8x8xf32>
    %13 = arith.divf %9, %12 : vector<2x8x8xf32>
    %c0_8 = arith.constant 0 : index
    %c0_9 = arith.constant 0 : index
    %c0_10 = arith.constant 0 : index
    %14 = vector.load %arg6[%c0_8, %c0_9, %c0_10] : memref<2x8x8xf32, #tpu.memory_space<vmem>>, vector<2x8x8xf32>
    tpu.vector_store %arg6[%c0_8, %c0_9, %c0_10], %13 {strides = array<i32>} : memref<2x8x8xf32, #tpu.memory_space<vmem>>, vector<2x8x8xf32>,
    %c0_11 = arith.constant 0 : index
    %c0_12 = arith.constant 0 : index
    %c0_13 = arith.constant 0 : index
    %15 = vector.load %arg6[%c0_11, %c0_12, %c0_13] : memref<2x8x8xf32, #tpu.memory_space<vmem>>, vector<2x8x8xf32>
    %c0_14 = arith.constant 0 : index
    %c0_15 = arith.constant 0 : index
    %c0_16 = arith.constant 0 : index
    %16 = vector.load %arg4[%c0_14, %c0_15, %c0_16] : memref<2x8x32xf32, #tpu.memory_space<vmem>>, vector<2x8x32xf32>
    %cst_17 = arith.constant dense<0.000000e+00> : vector<2x8x32xf32>
    %17 = tpu.matmul %15, %16, %cst_17 {dimension_numbers = #tpu.dot_dimension_numbers<[2], [1], [1], [2], [0, 0, 0, 1, 1, 2], [0], [0]>} : vector<2x8x8xf32>, vector<2x8x32xf32>, vector<2x8x32xf32> -> vector<2x8x32xf32>
    %c0_18 = arith.constant 0 : index
    %c0_19 = arith.constant 0 : index
    %c0_20 = arith.constant 0 : index
    %18 = vector.load %arg5[%c0_18, %c0_19, %c0_20] : memref<2x8x32xf32, #tpu.memory_space<vmem>>, vector<2x8x32xf32>
    tpu.vector_store %arg5[%c0_18, %c0_19, %c0_20], %17 {strides = array<i32>} : memref<2x8x32xf32, #tpu.memory_space<vmem>>, vector<2x8x32xf32>,
    return
  }
  func.func @transform_0(%arg0: i32, %arg1: i32) -> (i32, i32, i32) {
    %c0_i32 = arith.constant 0 : i32
    %c0_i32_0 = arith.constant 0 : i32
    return %arg0, %arg1, %c0_i32 : i32, i32, i32
  }
  func.func @transform_1(%arg0: i32, %arg1: i32) -> (i32, i32, i32) {
    %c0_i32 = arith.constant 0 : i32
    %c0_i32_0 = arith.constant 0 : i32
    %c0_i32_1 = arith.constant 0 : i32
    return %arg0, %c0_i32, %c0_i32_0 : i32, i32, i32
  }
  func.func @transform_2(%arg0: i32, %arg1: i32) -> (i32, i32, i32) {
    %c0_i32 = arith.constant 0 : i32
    %c0_i32_0 = arith.constant 0 : i32
    %c0_i32_1 = arith.constant 0 : i32
    return %arg0, %c0_i32, %c0_i32_0 : i32, i32, i32
  }
  func.func @transform_3(%arg0: i32, %arg1: i32) -> (i32, i32, i32) {
    %c0_i32 = arith.constant 0 : i32
    %c0_i32_0 = arith.constant 0 : i32
    return %arg0, %arg1, %c0_i32 : i32, i32, i32
  }
  func.func @transform_4(%arg0: i32, %arg1: i32) -> (i32, i32, i32) {
    %c0_i32 = arith.constant 0 : i32
    %c0_i32_0 = arith.constant 0 : i32
    return %arg0, %arg1, %c0_i32 : i32, i32, i32
  }
}

</mosaic_0001>

<bundles_post_ra>
// kernel: tpu_custom_call.1
= control target key start
LH: loop header
LB: loop body
LE: loop exit
PB: predicated region body
PF: predicated region fallthrough
CT: control target
= control target key end

     0   :  { %10 = vsyncpa [#allocation3], 0  ;;  %s1491_s0 = inlined_call_operand.hbm [shape: f32[4,8,32], index: 0, kind: input, shape index: {}]   ;;  %s1492_s1 = inlined_call_operand.hbm [shape: f32[4,8,32], index: 1, kind: input, shape index: {}]   ;;  %s1493_s2 = inlined_call_operand.hbm [shape: f32[4,8,32], index: 2, kind: input, shape index: {}]   ;;  %s1494_s3 = inlined_call_operand.hbm [shape: f32[4,8,32], index: 3, kind: output, shape index: {0}]   ;;  %s1495_s4 = inlined_call_operand.hbm [shape: f32[4,8,8], index: 4, kind: output, shape index: {1}]  }
   0x1   :  { %12 = vsyncpa [#allocation3 + $0x1], 0 }
   0x2   :  { %13 = vsyncpa [#allocation6], 0 }
   0x3   :  { %14 = vsyncpa [#allocation4], 0 }
   0x4   :  { %16 = vsyncpa [#allocation4 + $0x1], 0 }
   0x5   :  { %17 = vsyncpa [#allocation10], 0 }
   0x6   :  { %19 = vsyncpa [#allocation10 + $0x1], 0  ;;  %s1203_s15 = smov 0   ;;  %s1205_s16 = smov 0  }
   0x7   :  { %s1207_s17 = smov 0   ;;  %s1209_s18 = smov 0  }
   0x8   :  { %s1211_s19 = smov 0   ;;  %s1213_s20 = smov 0  }
   0x9 LB: > { %s811_s21 = sadd.s32 4294967295, %s1165_s20   ;;  %s812_s22 = sadd.s32 4294967294, %s1165_s20   ;;  %s1165_s20 = sphi %s1213_s20, %s25_s20   ;;  %s1161_s19 = sphi %s1211_s19, %s1517_s19   ;;  %s1157_s18 = sphi %s1209_s18, %s1516_s18   ;;  %s1153_s17 = sphi %s1207_s17, %s1515_s17   ;;  %s1149_s16 = sphi %s1205_s16, %s1514_s16   ;;  %s1145_s15 = sphi %s1203_s15, %s1513_s15  }
   0xa   : > { %p59_p0 = scmp.ne.s32.totalorder %s1149_s16, %s1145_s15  ;;  %p60_p1 = scmp.eq.s32.totalorder %s811_s21, 0 }
   0xb   : > { %p1235_p2 = scmp.eq.s32.totalorder %s811_s21, 1  ;;  %p143_p3 = scmp.eq.s32.totalorder %s812_s22, 1 }
   0xc   : > { %p1239_p4 = por %p60_p1, %p59_p0  ;;  %p813_p5 = scmp.ge.s32.totalorder %s1165_s20, 1 }
   0xd   : > { %s1500_s23 = scalar_select %p1235_p2, 1, 0 }
   0xe   : > { %s1501_s24 = scalar_select %p1239_p4, 1, 0 }
   0xf   : > { %p1244_p6 = por %p143_p3, %p59_p0  ;;  %p178_p7 = scmp.lt.s32.totalorder %s1165_s20, 3 }
  0x10   : > { %s1249_s26 = sshll.u32 %s1157_s18, 8  ;;  %s1167_s5 = smov [#allocation5]  }
  0x11   : > { %s1502_s25 = scalar_select %p1244_p6, 1, 0 }
  0x12   : > { %p1251_p8 = pnand %p813_p5, %p178_p7  ;;  %s1259_s30 = scalar_lea.hbm %s1492_s1, %s1249_s26 }
  0x13   : > { %s193_s6 = sshll.u32 %s1167_s5, 4  ;;  %s1269_s9 = scalar_lea.hbm %s1493_s2, %s1249_s26  ;;  %s1263_s6 = int_to_ptr.vmem [resolvable:$true] %s193_s6 }
  0x14   : > { %s1503_s27 = scalar_select %p1251_p8, 1, 0 }
  0x15   : > { %p883_p9 = pneg %p1251_p8  ;;  %s1168_s11 = smov [#allocation7]  }
  0x16   : > { %s209_s12 = sshll.u32 %s1168_s11, 4  ;;  %s967_s13 = scalar_lea.hbm %s1259_s30, 256  ;;  %s210_s12 = int_to_ptr.vmem [resolvable:$true] %s209_s12 }
  0x17   : > { %p1273_p10 = pnand %p883_p9, %p1239_p4  ;;  %p968_p12 = scmp.ne.s32.totalorder %s1259_s30, %s967_s13 }
  0x18   : > { %s972_s21 = scalar_lea.hbm %s1492_s1, 512  ;;  %p973_p3 = scmp.lt.s32.totalorder %s1259_s30, %s1492_s1 }
  0x19   : > { %p969_p13 = pneg %p1273_p10  ;;  %p974_p5 = scmp.lt.s32.totalorder %s972_s21, %s967_s13 }
  0x1b   : > { %p970_p0 = pnand %p969_p13, %p968_p12  ;;  %p975_p7 = por %p974_p5, %p973_p3 }
  0x1d   : > { %p971_p1 = pneg %p970_p0 }
  0x1f   : > { %p976_p9 = pnand %p975_p7, %p971_p1 }
  0x21   : > { %979 = shalt.err (!%p976_p9)
}
  0x22   : > { %s980_s29 = scalar_lea.vmem %s1263_s6, 256  ;;  %p988_p6 = scmp.lt.s32.totalorder %s1263_s6, %s1263_s6 }
  0x23   : > { %p981_p11 = scmp.ne.s32.totalorder %s1263_s6, %s980_s29  ;;  %p989_p4 = scmp.lt.s32.totalorder %s980_s29, %s980_s29 }
  0x25   : > { %p983_p12 = pnand %p981_p11, %p969_p13  ;;  %p990_p8 = por %p989_p4, %p988_p6 }
  0x27   : > { %p984_p0 = pneg %p983_p12 }
  0x29   : > { %p991_p2 = pnand %p990_p8, %p984_p0 }
  0x2b   : > { %994 = shalt.err (!%p991_p2)
}
  0x2c   : > { %s1499_s5 = smov 128   ;;  %s1170_s7 = smov 8  }
  0x2d   : > { %886 = dma.hbm_to_vmem [thread:$0]  (!%p1273_p10), %s1259_s30, 256, %s1263_s6, [#allocation6], %s1499_s5, %s1499_s5, %s1170_s7  }
  0x2e   : > { %s995_s8 = scalar_lea.hbm %s1269_s9, 256  ;;  %s1000_s14 = scalar_lea.hbm %s1493_s2, 512 }
  0x2f   : > { %p996_p11 = scmp.ne.s32.totalorder %s1269_s9, %s995_s8  ;;  %p1001_p6 = scmp.lt.s32.totalorder %s1269_s9, %s1493_s2 }
  0x30   : > { %p1002_p8 = scmp.lt.s32.totalorder %s1000_s14, %s995_s8 }
  0x31   : > { %p998_p2 = pnand %p996_p11, %p969_p13 }
  0x32   : > { %p1003_p1 = por %p1002_p8, %p1001_p6 }
  0x33   : > { %p999_p4 = pneg %p998_p2 }
  0x35   : > { %p1004_p3 = pnand %p1003_p1, %p999_p4 }
  0x37   : > { %1007 = shalt.err (!%p1004_p3)
}
  0x38   : > { %s1008_s30 = scalar_lea.vmem %s210_s12, 256  ;;  %p1016_p12 = scmp.lt.s32.totalorder %s210_s12, %s210_s12 }
  0x39   : > { %p1009_p5 = scmp.ne.s32.totalorder %s210_s12, %s1008_s30  ;;  %p1017_p0 = scmp.lt.s32.totalorder %s1008_s30, %s1008_s30 }
  0x3b   : > { %p1011_p7 = pnand %p1009_p5, %p969_p13  ;;  %p1018_p11 = por %p1017_p0, %p1016_p12 }
  0x3d   : > { %p1012_p9 = pneg %p1011_p7 }
  0x3f   : > { %p1019_p2 = pnand %p1018_p11, %p1012_p9 }
  0x41   : > { %1022 = shalt.err (!%p1019_p2)
}
  0x42   : > { %889 = dma.hbm_to_vmem [thread:$0]  (!%p1273_p10), %s1269_s9, 256, %s210_s12, [#allocation6], %s1499_s5, %s1499_s5, %s1170_s7  }
  0x43   : > { %s37_s6 = sadd.s32 1, %s1161_s19  ;;  %s46_s22 = sadd.s32 1, %s1153_s17 }
  0x44   : > { %p39_p13 = scmp.ge.s32.totalorder %s37_s6, 2  ;;  %p53_p4 = scmp.ne.s32.totalorder %s1153_s17, %s1149_s16 }
  0x45   : > { %p54_p6 = scmp.eq.s32.totalorder %s1165_s20, 0  ;;  %p901_p8 = scmp.lt.s32.totalorder %s1165_s20, 2 }
  0x46   : > { %s1519_s6 = smov (%p39_p13, %s37_s6), 0  ;;  %p1505_p3 = scmp.ne.s32.totalorder %s1500_s23, 0 }
  0x47   : > { %p55_p1 = por %p54_p6, %p53_p4  ;;  %s41_s28 = ssub.s32 %s1161_s19, %s1519_s6 }
  0x48   : > { %p1337_p5 = por %p1505_p3, %p53_p4  ;;  %s223_s29 = sand.u32 1, %s1153_s17  }
  0x49   : > { %p44_p7 = scmp.eq.s32.totalorder %s41_s28, 0  ;;  %s819_s9 = sshll.u32 %s223_s29, 4 }
  0x4a   : > { %s842_s12 = sshll.u32 %s1161_s19, 8  ;;  %s227_s18 = scalar_lea.vmem [#allocation2], %s819_s9 }
  0x4b   : > { %s1346_s8 = scalar_select %p44_p7, %s1153_s17, %s46_s22  }
  0x4c   : > { %s234_s14 = scalar_lea.hbm %s1491_s0, %s842_s12  ;;  %s235_s21 = sshll.u32 %s227_s18, 4  ;;  %s236_s21 = int_to_ptr.vmem [resolvable:$true] %s235_s21 }
  0x4d   : > { %p1353_p10 = pnand %p901_p8, %p55_p1  ;;  %s224_s30 = scalar_lea.sflag [#allocation3], %s223_s29 }
  0x4e   : > { %s1036_s28 = scalar_lea.vmem %s236_s21, 256  ;;  %s1171_s22 = smov [#allocation2]  }
  0x4f   : > { %p1025_p9 = pneg %p1353_p10  ;;  %p1037_p12 = scmp.ne.s32.totalorder %s236_s21, %s1036_s28 }
  0x50   : > { %s1041_s5 = sshll.u32 %s1171_s22, 4  ;;  %s1042_s5 = int_to_ptr.vmem [resolvable:$false] %s1041_s5 }
  0x51   : > { %p1039_p0 = pnand %p1037_p12, %p1025_p9  ;;  %s1043_s12 = scalar_lea.vmem %s1042_s5, 512 }
  0x52   : > { %p1044_p2 = scmp.lt.s32.totalorder %s236_s21, %s1042_s5  ;;  %p1045_p13 = scmp.lt.s32.totalorder %s1043_s12, %s1036_s28 }
  0x53   : > { %p1040_p11 = pneg %p1039_p0 }
  0x54   : > { %p1046_p4 = por %p1045_p13, %p1044_p2 }
  0x56   : > { %p1047_p6 = pnand %p1046_p4, %p1040_p11 }
  0x58   : > { %1050 = shalt.err (!%p1047_p6)
}
  0x59   : > { %s1508_s9 = smov 128   ;;  %p1509_p8 = scmp.ne.s32.totalorder %s1503_s27, 0 }
  0x5a   : > { %893 = dma.hbm_to_vmem [thread:$0]  (!%p1353_p10), %s234_s14, 256, %s236_s21, %s224_s30, %s1508_s9, %s1508_s9, %s1170_s7  }
  0x5b   : > { %247 = sbr.rel (%p1509_p8) target bundleno = 829 (0x33d), region = 32  ;;  %s1367_s29 = sand.u32 (!%p1509_p8), 1, %s1149_s16  }
  0x5c   : > { %s1370_s5 = sshll.u32 (!%p1509_p8), %s1367_s29, 4  ;;  %s250_s11 = scalar_lea.sflag (!%p1509_p8), [#allocation3], %s1367_s29 }
  0x5d   : > { %s253_s13 = scalar_lea.vmem (!%p1509_p8), [#allocation2], %s1370_s5  ;;  %p1510_p1 = scmp.ne.s32.totalorder (!%p1509_p8), %s1501_s24, 0 }
  0x60   : > { %1128 = dma.done.wait (%p1510_p1), %s250_s11, 256  }
  0x61   : > { %1130 = vsyncadd (%p1510_p1), %s250_s11, 4294967040 }
  0x62   : > { %1132 = dma.done.wait (%p1510_p1), [#allocation6], 512  }
  0x63   : > { %1134 = vsyncadd (%p1510_p1), [#allocation6], 4294966784  ;;  %v1172_v0 = vmov 0.0   ;;  %vm1173_vm0 = vmmov 0   ;;  %vm302_vm1 = vcmask 261120   ;;  %v300_v1 = vld [vmem:[#allocation5] sm:$0xff]  ;;  %s1403_s18 = scalar_lea.hbm %s1495_s4, %s1249_s26 }
  0x64   : > { %853 = vmatprep.subr.mxu0 %v1172_v0  ;;  %858 = vmatprep.subr.mxu1 %v1172_v0  ;;  %v301_v2 = vld [vmem:[#allocation5 + $0x8] sm:$0xff]  ;;  %v296_v3 = vld [vmem:[%s253_s13] sm:$0xff]  ;;  %vm455_vm2 = vcmask 64512   ;;  %v483_v24 = vld [vmem:[#allocation7 + $0x8] sm:$0xff]  ;;  %s290_s24 = scalar_lea.vmem [#allocation9], %s1370_s5  ;;  %s638_s21 = scalar_lea.sflag [#allocation10], %s1367_s29 }
  0x65   : > { %855 = vmatprep.mubr.msk.f32.mxu0 %vm1173_vm0, %v1172_v0  ;;  %860 = vmatprep.mubr.msk.f32.mxu1 %vm1173_vm0, %v1172_v0  ;;  %v298_v4 = vmul.f32 0.17677669, %v296_v3  ;;  %v297_v5 = vld [vmem:[%s253_s13 + $0x8] sm:$0xff]  ;;  %v482_v23 = vld [vmem:[#allocation7] sm:$0xff]  ;;  %s669_s27 = sshll.u32 %s290_s24, 4  ;;  %s1174_s30 = smov [#allocation9]   ;;  %s1405_s27 = int_to_ptr.vmem [resolvable:$true] %s669_s27 }
  0x66   : > { %854 = vmatpush3.xpose.msk.msra.mxu0 %vm302_vm1, %v300_v1  ;;  %859 = vmatpush3.xpose.msk.msra.mxu1 %vm302_vm1, %v301_v2  ;;  %v299_v6 = vmul.f32 0.17677669, %v297_v5  ;;  %s1051_s23 = scalar_lea.vmem %s1405_s27, 256  ;;  %s1055_s28 = sshll.u32 %s1174_s30, 4  ;;  %s1056_s28 = int_to_ptr.vmem [resolvable:$false] %s1055_s28 }
  0x67   : > { %863 = vmatprep.subr.mxu0 %v1172_v0  ;;  %868 = vmatprep.subr.mxu1 %v1172_v0  ;;  %p1052_p3 = scmp.ne.s32.totalorder %s1405_s27, %s1051_s23  ;;  %s1057_s22 = scalar_lea.vmem %s1056_s28, 512 }
  0x68   : > { %p1058_p9 = scmp.lt.s32.totalorder %s1405_s27, %s1056_s28  ;;  %p1059_p12 = scmp.lt.s32.totalorder %s1057_s22, %s1051_s23 }
  0x69   : > { %856 = vmatmul.mubr.msk.f32.vlgmr.msra.gmra.mxu0 %vm302_vm1, %v298_v4  ;;  %861 = vmatmul.mubr.msk.f32.vlgmr.msra.gmra.mxu1 %vm302_vm1, %v299_v6  ;;  %p1053_p7 = pnand %p1052_p3, %p1337_p5 }
  0x6a   : > { %865 = vmatprep.mubr.msk.f32.mxu0 %vm1173_vm0, %v1172_v0  ;;  %870 = vmatprep.mubr.msk.f32.mxu1 %vm1173_vm0, %v1172_v0  ;;  %p1060_p0 = por %p1059_p12, %p1058_p9 }
  0x6b   : > { %864 = vmatpush3.msra.mxu0 %v482_v23  ;;  %869 = vmatpush3.msra.mxu1 %v483_v24  ;;  %p1054_p10 = pneg %p1053_p7 }
  0x6d   : > { %p1061_p11 = pnand %p1060_p0, %p1054_p10 }
 0x129   : > { %v375_v7 = vpop.f32.mrf.mxu0  ;;  %v451_v8 = vpop.f32.mrf.mxu1 }
 0x12a   : > { %v456_v9 = vsel %vm455_vm2, %v375_v7, -inf  ;;  %v459_v12 = vsel %vm455_vm2, %v451_v8, -inf }
 0x12b   : > { %457 = vmax.xlane.f32.xlu0 %v456_v9  ;;  %v857_v10 = vpop.f32.mrf.mxu0  ;;  %v862_v11 = vpop.f32.mrf.mxu1 }
 0x12f   : > { %460 = vmax.xlane.f32.xlu0 %v459_v12 }
 0x1b4   : > { %v458_v13 = vpop.xlane.xlu0 %457 }
 0x1b5   : > { %v462_v14 = vsub.f32 %v375_v7, %v458_v13 }
 0x1b7   : > { %v464_v15 = vmul.f32 1.442695, %v462_v14 }
 0x1b8   : > { %v461_v16 = vpop.xlane.xlu0 %460 }
 0x1b9   : > { %959 = vpow2.f32 %v464_v15  ;;  %v463_v17 = vsub.f32 %v451_v8, %v461_v16 }
 0x1bb   : > { %v466_v18 = vmul.f32 1.442695, %v463_v17 }
 0x1bd   : > { %961 = vpow2.f32 %v466_v18 }
 0x1c6   : > { %v960_v19 = vpop.eup %959 }
 0x1c7   : > { %v468_v20 = vsel %vm455_vm2, %v960_v19, 0.0 }
 0x1c8   : > { %469 = vadd.xlane.f32.xlu1 %v468_v20 }
 0x1ca   : > { %v962_v21 = vpop.eup %961 }
 0x1cb   : > { %v471_v22 = vsel %vm455_vm2, %v962_v21, 0.0 }
 0x1cc   : > { %472 = vadd.xlane.f32.xlu1 %v471_v22 }
 0x251   : > { %v470_v25 = vpop.xlane.xlu1 %469 }
 0x252   : > { %963 = vrcp.f32 %v470_v25 }
 0x255   : > { %v473_v26 = vpop.xlane.xlu1 %472 }
 0x256   : > { %965 = vrcp.f32 %v473_v26 }
 0x25f   : > { %v964_v27 = vpop.eup %963 }
 0x260   : > { %v475_v28 = vmul.f32 %v964_v27, %v960_v19 }
 0x262   : > { %478 = vst.msk [vmem:[%s290_s24] sm:$0xff] %vm455_vm2, %v475_v28 }
 0x263   : > { %v966_v29 = vpop.eup %965 }
 0x264   : > { %v477_v30 = vmul.f32 %v966_v29, %v962_v21 }
 0x266   : > { %479 = vst.msk [vmem:[%s290_s24 + $0x8] sm:$0xff] %vm455_vm2, %v477_v30 }
 0x269   : > { %v480_v31 = vld [vmem:[%s290_s24] sm:$0xff] }
 0x26a   : > { %866 = vmatmul.mubr.msk.f32.vlgmr.msra.gmra.mxu0 %vm455_vm2, %v480_v31 }
 0x26d   : > { %v481_v32 = vld [vmem:[%s290_s24 + $0x8] sm:$0xff] }
 0x26e   : > { %871 = vmatmul.mubr.msk.f32.vlgmr.msra.gmra.mxu1 %vm455_vm2, %v481_v32 }
 0x26f   : > { %1064 = shalt.err (!%p1061_p11)
}
 0x270   : > { %s1065_s12 = scalar_lea.hbm %s1403_s18, 256  ;;  %s1069_s13 = scalar_lea.hbm %s1495_s4, 512 }
 0x271   : > { %p1066_p2 = scmp.ne.s32.totalorder %s1403_s18, %s1065_s12  ;;  %p1070_p6 = scmp.lt.s32.totalorder %s1403_s18, %s1495_s4 }
 0x272   : > { %p1071_p8 = scmp.lt.s32.totalorder %s1069_s13, %s1065_s12 }
 0x273   : > { %p1067_p13 = pnand %p1066_p2, %p1337_p5 }
 0x274   : > { %p1072_p1 = por %p1071_p8, %p1070_p6 }
 0x275   : > { %p1068_p4 = pneg %p1067_p13 }
 0x277   : > { %p1073_p3 = pnand %p1072_p1, %p1068_p4 }
 0x279   : > { %1076 = shalt.err (!%p1073_p3)
}
 0x27a   : > { %s1175_s14 = smov 128   ;;  %s1176_s23 = smov 8  }
 0x27b   : > { %880 = dma.vmem_to_hbm [thread:$0]  (%p1337_p5), %s1405_s27, 256, %s1403_s18, %s638_s21, %s1175_s14, %s1175_s14, %s1176_s23  }
 0x27c   : > { %s283_s30 = scalar_lea.vmem [#allocation8], %s1370_s5  ;;  %s1441_s9 = scalar_lea.hbm %s1494_s3, %s1249_s26 }
 0x27d   : > { %s652_s28 = sshll.u32 %s283_s30, 4  ;;  %s633_s5 = scalar_lea.sflag [#allocation4], %s1367_s29  ;;  %s1435_s28 = int_to_ptr.vmem [resolvable:$true] %s652_s28 }
 0x27e   : > { %s1077_s27 = scalar_lea.vmem %s1435_s28, 256  ;;  %s1177_s18 = smov [#allocation8]  }
 0x27f   : > { %p1078_p7 = scmp.ne.s32.totalorder %s1435_s28, %s1077_s27  ;;  %s1081_s21 = sshll.u32 %s1177_s18, 4  ;;  %s1082_s21 = int_to_ptr.vmem [resolvable:$false] %s1081_s21 }
 0x280   : > { %s1083_s11 = scalar_lea.vmem %s1082_s21, 512  ;;  %p1084_p12 = scmp.lt.s32.totalorder %s1435_s28, %s1082_s21 }
 0x281   : > { %p1079_p10 = pnand %p1078_p7, %p1337_p5  ;;  %p1085_p0 = scmp.lt.s32.totalorder %s1083_s11, %s1077_s27 }
 0x283   : > { %p1080_p9 = pneg %p1079_p10  ;;  %p1086_p11 = por %p1085_p0, %p1084_p12 }
 0x285   : > { %p1087_p2 = pnand %p1086_p11, %p1080_p9 }
 0x32a   : > { %v553_v33 = vpop.f32.mrf.mxu0 }
 0x32b   : > { %630 = vst.msk [vmem:[%s283_s30] sm:$0xff] %vm302_vm1, %v553_v33 }
 0x32c   : > { %v867_v34 = vpop.f32.mrf.mxu0 }
 0x32e   : > { %v626_v35 = vpop.f32.mrf.mxu1 }
 0x32f   : > { %631 = vst.msk [vmem:[%s283_s30 + $0x8] sm:$0xff] %vm302_vm1, %v626_v35 }
 0x330   : > { %v872_v36 = vpop.f32.mrf.mxu1 }
 0x331   : > { %1090 = shalt.err (!%p1087_p2)
}
 0x332   : > { %s1091_s26 = scalar_lea.hbm %s1441_s9, 256  ;;  %s1095_s24 = scalar_lea.hbm %s1494_s3, 512 }
 0x333   : > { %p1092_p13 = scmp.ne.s32.totalorder %s1441_s9, %s1091_s26  ;;  %p1096_p8 = scmp.lt.s32.totalorder %s1441_s9, %s1494_s3 }
 0x334   : > { %p1097_p1 = scmp.lt.s32.totalorder %s1095_s24, %s1091_s26 }
 0x335   : > { %p1093_p4 = pnand %p1092_p13, %p1337_p5 }
 0x336   : > { %p1098_p3 = por %p1097_p1, %p1096_p8 }
 0x337   : > { %p1094_p6 = pneg %p1093_p4 }
 0x339   : > { %p1099_p7 = pnand %p1098_p3, %p1094_p6 }
 0x33b   : > { %1102 = shalt.err (!%p1099_p7)
}
 0x33c   : > { %879 = dma.vmem_to_hbm [thread:$0]  (%p1337_p5), %s1435_s28, 256, %s1441_s9, %s633_s5, %s1175_s14, %s1175_s14, %s1176_s23  }
 0x33d PF: > { %s684_s22 = sand.u32 1, %s1145_s15   ;;  %p1511_p10 = scmp.ne.s32.totalorder %s1502_s25, 0 }
 0x33e   : > { %p1512_p9 = scmp.ge.s32.totalorder %s1165_s20, 2  ;;  %s685_s12 = scalar_lea.sflag [#allocation4], %s684_s22 }
 0x340   : > { %p895_p12 = pnand %p1512_p9, %p1511_p10 }
 0x342   : > { %p896_p0 = pneg %p895_p12 }
 0x344   : > { %1136 = dma.done.wait (%p896_p0), %s685_s12, 256  }
 0x345   : > { %1138 = vsyncadd (%p896_p0), %s685_s12, 4294967040  ;;  %s694_s27 = scalar_lea.sflag [#allocation10], %s684_s22 }
 0x346   : > { %1140 = dma.done.wait (%p896_p0), %s694_s27, 256  }
 0x347   : > { %1142 = vsyncadd (%p896_p0), %s694_s27, 4294967040  ;;  %s25_s20 = sadd.s32 1, %s1165_s20   ;;  %s1513_s15 = smov %s1149_s16 }
 0x348   : > { %p22_p11 = scmp.ge.s32.totalorder %s25_s20, 4   ;;  %s1514_s16 = smov %s1153_s17 }
 0x349   : > { %s1515_s17 = smov %s1346_s8  ;;  %s1516_s18 = smov %s1161_s19 }
 0x34a   : > { %s1517_s19 = smov %s1519_s6  ;;  %24 = sbr.rel (!%p22_p11) target bundleno = 9 (0x9), region = 104 }
 0x34f   :  { %699 = vsyncpa [#allocation3], 1 }
 0x350   :  { %701 = vsyncpa [#allocation3 + $0x1], 1 }
 0x351   :  { %702 = vsyncpa [#allocation6], 1 }
 0x352   :  { %703 = vsyncpa [#allocation4], 1 }
 0x353   :  { %705 = vsyncpa [#allocation4 + $0x1], 1 }
 0x354   :  { %706 = vsyncpa [#allocation10], 1 }
 0x355   :  { %708 = vsyncpa [#allocation10 + $0x1], 1 }

// kernel: tpu_custom_call.1
= control target key start
LH: loop header
LB: loop body
LE: loop exit
PB: predicated region body
PF: predicated region fallthrough
CT: control target
= control target key end

     0   :  { %s1534_s0 = inlined_call_operand.hbm [shape: f32[4,8,32], index: 0, kind: input, shape index: {}]   ;;  %s1535_s1 = inlined_call_operand.hbm [shape: f32[4,8,32], index: 1, kind: input, shape index: {}]   ;;  %s1536_s2 = inlined_call_operand.hbm [shape: f32[4,8,32], index: 2, kind: input, shape index: {}]   ;;  %s1537_s3 = inlined_call_operand.hbm [shape: f32[4,8,32], index: 3, kind: output, shape index: {0}]   ;;  %s1538_s4 = inlined_call_operand.hbm [shape: f32[4,8,8], index: 4, kind: output, shape index: {1}]  }
   0x1   :  { %1545 = sst [smem:[#allocation19_spill]] %s1535_s1 }
   0x2   :  { %10 = vsyncpa [#allocation3], 0 }
   0x3   :  { %12 = vsyncpa [#allocation3 + $0x1], 0 }
   0x4   :  { %13 = vsyncpa [#allocation6], 0 }
   0x5   :  { %15 = vsyncpa [#allocation6 + $0x1], 0 }
   0x6   :  { %16 = vsyncpa [#allocation4], 0 }
   0x7   :  { %18 = vsyncpa [#allocation4 + $0x1], 0 }
   0x8   :  { %19 = vsyncpa [#allocation10], 0 }
   0x9   :  { %21 = vsyncpa [#allocation10 + $0x1], 0  ;;  %s1256_s15 = smov 0   ;;  %s1258_s16 = smov 0  }
   0xa   :  { %s1260_s17 = smov 0   ;;  %s1262_s18 = smov 0  }
   0xb   :  { %s1264_s19 = smov 0   ;;  %s1266_s20 = smov 0  }
   0xc LB: > { %1546 = sst [smem:[#allocation15_spill]] %s1214_s19  ;;  %s1287_s21 = sadd.s32 4294967295, %s1218_s20   ;;  %s1218_s20 = sphi %s1266_s20, %s27_s20   ;;  %s1214_s19 = sphi %s1264_s19, %s1563_s19   ;;  %s1210_s18 = sphi %s1262_s18, %s1562_s18   ;;  %s1206_s17 = sphi %s1260_s17, %s1566_s17   ;;  %s1202_s16 = sphi %s1258_s16, %s1565_s16   ;;  %s1198_s15 = sphi %s1256_s15, %s1564_s15  }
   0xd   : > { %s864_s22 = sadd.s32 4294967294, %s1218_s20   ;;  %s39_s23 = sadd.s32 1, %s1214_s19 }
   0xe   : > { %s48_s24 = sadd.s32 1, %s1206_s17  ;;  %p41_p0 = scmp.ge.s32.totalorder %s39_s23, 2 }
   0xf   : > { %p55_p1 = scmp.ne.s32.totalorder %s1206_s17, %s1202_s16  ;;  %p56_p2 = scmp.eq.s32.totalorder %s1218_s20, 0 }
  0x10   : > { %p61_p3 = scmp.ne.s32.totalorder %s1202_s16, %s1198_s15  ;;  %s1568_s23 = smov (%p41_p0, %s39_s23), 0 }
  0x11   : > { %1547 = sst [smem:[#allocation16_spill]] %s1568_s23  ;;  %p1299_p4 = por %p56_p2, %p55_p1 }
  0x12   : > { %p62_p5 = scmp.eq.s32.totalorder %s1287_s21, 0  ;;  %s43_s26 = ssub.s32 %s1214_s19, %s1568_s23 }
  0x13   : > { %p139_p6 = scmp.eq.s32.totalorder %s1287_s21, 1  ;;  %p46_p7 = scmp.eq.s32.totalorder %s43_s26, 0 }
  0x14   : > { %p1307_p8 = por %p62_p5, %p61_p3  ;;  %p145_p10 = scmp.eq.s32.totalorder %s864_s22, 1 }
  0x15   : > { %p1311_p9 = por %p139_p6, %p55_p1  ;;  %p956_p13 = scmp.lt.s32.totalorder %s1218_s20, 2 }
  0x16   : > { %s1316_s29 = scalar_select %p46_p7, %s1206_s17, %s48_s24  }
  0x17   : > { %p1318_p11 = por %p145_p10, %p61_p3  ;;  %s1539_s5 = sand.u32 1, %s1206_s17  }
  0x18   : > { %1551 = sst [smem:[#allocation17_spill]] %s1316_s29  ;;  %s1327_s6 = sshll.u32 %s1539_s5, 4 }
  0x19   : > { %s1552_s30 = scalar_select %p1318_p11, 1, 0 }
  0x1a   : > { %s1330_s7 = sshll.u32 %s1214_s19, 8  ;;  %p1334_p0 = pnand %p956_p13, %p1299_p4 }
  0x1b   : > { %1553 = sst [smem:[#allocation18_spill]] %s1552_s30  ;;  %s215_s9 = sand.u32 1, %s1218_s20  }
  0x1c   : > { %s1555_s1 = sld [smem:[#allocation19_spill]]  ;;  %s219_s13 = scalar_lea.vmem [#allocation5], %s1327_s6 }
  0x1d   : > { %s226_s14 = sshll.u32 %s219_s13, 4  ;;  %p876_p1 = scmp.ge.s32.totalorder %s1218_s20, 1  ;;  %s227_s14 = int_to_ptr.vmem [resolvable:$true] %s226_s14 }
  0x1e   : > { %p255_p2 = scmp.lt.s32.totalorder %s1218_s20, 3  ;;  %s1346_s22 = scalar_lea.sflag [#allocation6], %s215_s9 }
  0x1f   : > { %p1022_p3 = pneg %p1334_p0  ;;  %s1033_s24 = scalar_lea.vmem %s227_s14, 256 }
  0x20   : > { %p1034_p4 = scmp.ne.s32.totalorder %s227_s14, %s1033_s24  ;;  %s1220_s25 = smov [#allocation5]  }
  0x21   : > { %s1038_s26 = sshll.u32 %s1220_s25, 4  ;;  %s1039_s26 = int_to_ptr.vmem [resolvable:$false] %s1038_s26 }
  0x22   : > { %s225_s12 = scalar_lea.hbm %s1555_s1, %s1330_s7  ;;  %p1036_p5 = pnand %p1034_p4, %p1022_p3 }
  0x23   : > { %s1040_s10 = scalar_lea.vmem %s1039_s26, 512  ;;  %p1041_p7 = scmp.lt.s32.totalorder %s227_s14, %s1039_s26 }
  0x24   : > { %p1037_p6 = pneg %p1036_p5  ;;  %p1042_p10 = scmp.lt.s32.totalorder %s1040_s10, %s1033_s24 }
  0x26   : > { %p1043_p13 = por %p1042_p10, %p1041_p7 }
  0x28   : > { %p1044_p12 = pnand %p1043_p13, %p1037_p6 }
  0x2a   : > { %1047 = shalt.err (!%p1044_p12)
}
  0x2b   : > { %s1543_s11 = smov 128   ;;  %s1222_s9 = smov 8  }
  0x2c   : > { %945 = dma.hbm_to_vmem [thread:$0]  (!%p1334_p0), %s225_s12, 256, %s227_s14, %s1346_s22, %s1543_s11, %s1543_s11, %s1222_s9  }
  0x2d   : > { %p1363_p4 = pnand %p876_p1, %p255_p2  ;;  %s204_s26 = scalar_lea.hbm %s1534_s0, %s1330_s7 }
  0x2e   : > { %s197_s10 = scalar_lea.vmem [#allocation2], %s1327_s6  ;;  %s246_s19 = scalar_lea.hbm %s1536_s2, %s1330_s7 }
  0x2f   : > { %s205_s5 = sshll.u32 %s197_s10, 4  ;;  %s1557_s29 = sand.u32 1, %s1206_s17   ;;  %s206_s5 = int_to_ptr.vmem [resolvable:$true] %s205_s5 }
  0x30   : > { %s194_s30 = scalar_lea.sflag [#allocation3], %s1557_s29  ;;  %s1061_s12 = scalar_lea.vmem %s206_s5, 256 }
  0x31   : > { %p1062_p12 = scmp.ne.s32.totalorder %s206_s5, %s1061_s12  ;;  %s1223_s14 = smov [#allocation2]  }
  0x32   : > { %s1066_s11 = sshll.u32 %s1223_s14, 4  ;;  %s1067_s11 = int_to_ptr.vmem [resolvable:$false] %s1066_s11 }
  0x33   : > { %p1064_p1 = pnand %p1062_p12, %p1022_p3  ;;  %s1068_s24 = scalar_lea.vmem %s1067_s11, 512 }
  0x34   : > { %p1069_p5 = scmp.lt.s32.totalorder %s206_s5, %s1067_s11  ;;  %p1070_p6 = scmp.lt.s32.totalorder %s1068_s24, %s1061_s12 }
  0x35   : > { %p1065_p2 = pneg %p1064_p1 }
  0x36   : > { %p1071_p7 = por %p1070_p6, %p1069_p5 }
  0x38   : > { %p1072_p10 = pnand %p1071_p7, %p1065_p2 }
  0x3a   : > { %1075 = shalt.err (!%p1072_p10)
}
  0x3b   : > { %s1558_s1 = smov 128   ;;  %s240_s23 = scalar_lea.vmem [#allocation7], %s1327_s6 }
  0x3c   : > { %942 = dma.hbm_to_vmem [thread:$0]  (!%p1334_p0), %s204_s26, 256, %s206_s5, %s194_s30, %s1558_s1, %s1558_s1, %s1222_s9  }
  0x3d   : > { %s247_s29 = sshll.u32 %s240_s23, 4  ;;  %s1224_s11 = smov [#allocation7]   ;;  %s248_s29 = int_to_ptr.vmem [resolvable:$true] %s247_s29 }
  0x3e   : > { %s1089_s25 = scalar_lea.vmem %s248_s29, 256  ;;  %s1094_s10 = sshll.u32 %s1224_s11, 4  ;;  %s1095_s10 = int_to_ptr.vmem [resolvable:$false] %s1094_s10 }
  0x3f   : > { %p1090_p13 = scmp.ne.s32.totalorder %s248_s29, %s1089_s25  ;;  %s1096_s12 = scalar_lea.vmem %s1095_s10, 512 }
  0x40   : > { %p1097_p2 = scmp.lt.s32.totalorder %s248_s29, %s1095_s10  ;;  %p1098_p5 = scmp.lt.s32.totalorder %s1096_s12, %s1089_s25 }
  0x41   : > { %p1092_p12 = pnand %p1090_p13, %p1022_p3 }
  0x42   : > { %p1099_p6 = por %p1098_p5, %p1097_p2 }
  0x43   : > { %p1093_p1 = pneg %p1092_p12 }
  0x45   : > { %p1100_p7 = pnand %p1099_p6, %p1093_p1 }
  0x47   : > { %1103 = shalt.err (!%p1100_p7)
}
  0x48   : > { %948 = dma.hbm_to_vmem [thread:$0]  (!%p1334_p0), %s246_s19, 256, %s248_s29, %s1346_s22, %s1558_s1, %s1558_s1, %s1222_s9  }
  0x49   : > { %259 = sbr.rel (%p1363_p4) target bundleno = 812 (0x32c), region = 32  ;;  %s1404_s6 = sand.u32 (!%p1363_p4), 1, %s1202_s16  }
  0x4a   : > { %s1407_s8 = sshll.u32 (!%p1363_p4), %s1404_s6, 4  ;;  %s262_s26 = scalar_lea.sflag (!%p1363_p4), [#allocation3], %s1404_s6 }
  0x4b   : > { %s265_s14 = scalar_lea.vmem (!%p1363_p4), [#allocation2], %s1407_s8 }
  0x4e   : > { %1181 = dma.done.wait (%p1307_p8), %s262_s26, 256  }
  0x4f   : > { %1183 = vsyncadd (%p1307_p8), %s262_s26, 4294967040  ;;  %s270_s19 = sand.u32 1, %s1287_s21   ;;  %s274_s22 = scalar_lea.vmem [#allocation5], %s1407_s8 }
  0x50   : > { %s271_s7 = scalar_lea.sflag [#allocation6], %s270_s19 }
  0x51   : > { %1185 = dma.done.wait (%p1307_p8), %s271_s7, 512  }
  0x52   : > { %1187 = vsyncadd (%p1307_p8), %s271_s7, 4294966784  ;;  %v1225_v0 = vmov 0.0   ;;  %vm1226_vm0 = vmmov 0   ;;  %vm334_vm1 = vcmask 261120   ;;  %v332_v1 = vld [vmem:[%s274_s22] sm:$0xff]  ;;  %v333_v2 = vld [vmem:[%s274_s22 + $0x8] sm:$0xff] }
  0x53   : > { %909 = vmatprep.subr.mxu0 %v1225_v0  ;;  %914 = vmatprep.subr.mxu1 %v1225_v0  ;;  %v328_v3 = vld [vmem:[%s265_s14] sm:$0xff]  ;;  %v329_v5 = vld [vmem:[%s265_s14 + $0x8] sm:$0xff]  ;;  %vm487_vm2 = vcmask 64512   ;;  %s283_s21 = scalar_lea.vmem [#allocation7], %s1407_s8  ;;  %s322_s27 = scalar_lea.vmem [#allocation9], %s1407_s8 }
  0x54   : > { %911 = vmatprep.mubr.msk.f32.mxu0 %vm1226_vm0, %v1225_v0  ;;  %916 = vmatprep.mubr.msk.f32.mxu1 %vm1226_vm0, %v1225_v0  ;;  %v330_v4 = vmul.f32 0.17677669, %v328_v3  ;;  %v331_v6 = vmul.f32 0.17677669, %v329_v5  ;;  %v514_v23 = vld [vmem:[%s283_s21] sm:$0xff]  ;;  %v515_v24 = vld [vmem:[%s283_s21 + $0x8] sm:$0xff] }
  0x55   : > { %910 = vmatpush3.xpose.msk.msra.mxu0 %vm334_vm1, %v332_v1  ;;  %915 = vmatpush3.xpose.msk.msra.mxu1 %vm334_vm1, %v333_v2  ;;  %s899_s9 = sshll.u32 %s1210_s18, 8  ;;  %s701_s13 = sshll.u32 %s322_s27, 4  ;;  %s1447_s13 = int_to_ptr.vmem [resolvable:$true] %s701_s13 }
  0x56   : > { %919 = vmatprep.subr.mxu0 %v1225_v0  ;;  %924 = vmatprep.subr.mxu1 %v1225_v0  ;;  %s1445_s23 = scalar_lea.hbm %s1538_s4, %s899_s9  ;;  %s670_s29 = scalar_lea.sflag [#allocation10], %s1404_s6 }
  0x57   : > { %s1104_s25 = scalar_lea.vmem %s1447_s13, 256  ;;  %s1227_s11 = smov [#allocation9]  }
  0x58   : > { %912 = vmatmul.mubr.msk.f32.vlgmr.msra.gmra.mxu0 %vm334_vm1, %v330_v4  ;;  %917 = vmatmul.mubr.msk.f32.vlgmr.msra.gmra.mxu1 %vm334_vm1, %v331_v6  ;;  %p1105_p8 = scmp.ne.s32.totalorder %s1447_s13, %s1104_s25  ;;  %s1108_s10 = sshll.u32 %s1227_s11, 4  ;;  %s1109_s10 = int_to_ptr.vmem [resolvable:$false] %s1108_s10 }
  0x59   : > { %921 = vmatprep.mubr.msk.f32.mxu0 %vm1226_vm0, %v1225_v0  ;;  %926 = vmatprep.mubr.msk.f32.mxu1 %vm1226_vm0, %v1225_v0  ;;  %s1110_s12 = scalar_lea.vmem %s1109_s10, 512  ;;  %p1111_p4 = scmp.lt.s32.totalorder %s1447_s13, %s1109_s10 }
  0x5a   : > { %920 = vmatpush3.msra.mxu0 %v514_v23  ;;  %925 = vmatpush3.msra.mxu1 %v515_v24  ;;  %p1106_p0 = pnand %p1105_p8, %p1311_p9  ;;  %p1112_p10 = scmp.lt.s32.totalorder %s1110_s12, %s1104_s25 }
  0x5c   : > { %p1107_p3 = pneg %p1106_p0  ;;  %p1113_p13 = por %p1112_p10, %p1111_p4 }
  0x5e   : > { %p1114_p12 = pnand %p1113_p13, %p1107_p3 }
 0x118   : > { %v407_v7 = vpop.f32.mrf.mxu0  ;;  %v483_v8 = vpop.f32.mrf.mxu1 }
 0x119   : > { %v488_v9 = vsel %vm487_vm2, %v407_v7, -inf  ;;  %v491_v12 = vsel %vm487_vm2, %v483_v8, -inf }
 0x11a   : > { %489 = vmax.xlane.f32.xlu0 %v488_v9  ;;  %v913_v10 = vpop.f32.mrf.mxu0  ;;  %v918_v11 = vpop.f32.mrf.mxu1 }
 0x11e   : > { %492 = vmax.xlane.f32.xlu0 %v491_v12 }
 0x1a3   : > { %v490_v13 = vpop.xlane.xlu0 %489 }
 0x1a4   : > { %v494_v14 = vsub.f32 %v407_v7, %v490_v13 }
 0x1a6   : > { %v496_v15 = vmul.f32 1.442695, %v494_v14 }
 0x1a7   : > { %v493_v16 = vpop.xlane.xlu0 %492 }
 0x1a8   : > { %1012 = vpow2.f32 %v496_v15  ;;  %v495_v17 = vsub.f32 %v483_v8, %v493_v16 }
 0x1aa   : > { %v498_v18 = vmul.f32 1.442695, %v495_v17 }
 0x1ac   : > { %1014 = vpow2.f32 %v498_v18 }
 0x1b5   : > { %v1013_v19 = vpop.eup %1012 }
 0x1b6   : > { %v500_v20 = vsel %vm487_vm2, %v1013_v19, 0.0 }
 0x1b7   : > { %501 = vadd.xlane.f32.xlu1 %v500_v20 }
 0x1b9   : > { %v1015_v21 = vpop.eup %1014 }
 0x1ba   : > { %v503_v22 = vsel %vm487_vm2, %v1015_v21, 0.0 }
 0x1bb   : > { %504 = vadd.xlane.f32.xlu1 %v503_v22 }
 0x240   : > { %v502_v25 = vpop.xlane.xlu1 %501 }
 0x241   : > { %1016 = vrcp.f32 %v502_v25 }
 0x244   : > { %v505_v26 = vpop.xlane.xlu1 %504 }
 0x245   : > { %1018 = vrcp.f32 %v505_v26 }
 0x24e   : > { %v1017_v27 = vpop.eup %1016 }
 0x24f   : > { %v507_v28 = vmul.f32 %v1017_v27, %v1013_v19 }
 0x251   : > { %510 = vst.msk [vmem:[%s322_s27] sm:$0xff] %vm487_vm2, %v507_v28 }
 0x252   : > { %v1019_v29 = vpop.eup %1018 }
 0x253   : > { %v509_v30 = vmul.f32 %v1019_v29, %v1015_v21 }
 0x255   : > { %511 = vst.msk [vmem:[%s322_s27 + $0x8] sm:$0xff] %vm487_vm2, %v509_v30 }
 0x258   : > { %v512_v31 = vld [vmem:[%s322_s27] sm:$0xff] }
 0x259   : > { %922 = vmatmul.mubr.msk.f32.vlgmr.msra.gmra.mxu0 %vm487_vm2, %v512_v31 }
 0x25c   : > { %v513_v32 = vld [vmem:[%s322_s27 + $0x8] sm:$0xff] }
 0x25d   : > { %927 = vmatmul.mubr.msk.f32.vlgmr.msra.gmra.mxu1 %vm487_vm2, %v513_v32 }
 0x25e   : > { %1117 = shalt.err (!%p1114_p12)
}
 0x25f   : > { %s1118_s30 = scalar_lea.hbm %s1445_s23, 256  ;;  %s1122_s14 = scalar_lea.hbm %s1538_s4, 512 }
 0x260   : > { %p1119_p1 = scmp.ne.s32.totalorder %s1445_s23, %s1118_s30  ;;  %p1123_p6 = scmp.lt.s32.totalorder %s1445_s23, %s1538_s4 }
 0x261   : > { %p1124_p7 = scmp.lt.s32.totalorder %s1122_s14, %s1118_s30 }
 0x262   : > { %p1120_p2 = pnand %p1119_p1, %p1311_p9 }
 0x263   : > { %p1125_p8 = por %p1124_p7, %p1123_p6 }
 0x264   : > { %p1121_p5 = pneg %p1120_p2 }
 0x266   : > { %p1126_p0 = pnand %p1125_p8, %p1121_p5 }
 0x268   : > { %1129 = shalt.err (!%p1126_p0)
}
 0x269   : > { %s1228_s22 = smov 128   ;;  %s1229_s21 = smov 8  }
 0x26a   : > { %936 = dma.vmem_to_hbm [thread:$0]  (%p1311_p9), %s1447_s13, 256, %s1445_s23, %s670_s29, %s1228_s22, %s1228_s22, %s1229_s21  }
 0x26b   : > { %s315_s27 = scalar_lea.vmem [#allocation8], %s1407_s8  ;;  %s1484_s11 = scalar_lea.hbm %s1537_s3, %s899_s9 }
 0x26c   : > { %s684_s24 = sshll.u32 %s315_s27, 4  ;;  %s665_s8 = scalar_lea.sflag [#allocation4], %s1404_s6  ;;  %s1477_s24 = int_to_ptr.vmem [resolvable:$true] %s684_s24 }
 0x26d   : > { %s1130_s13 = scalar_lea.vmem %s1477_s24, 256  ;;  %s1230_s23 = smov [#allocation8]  }
 0x26e   : > { %p1131_p3 = scmp.ne.s32.totalorder %s1477_s24, %s1130_s13  ;;  %s1134_s29 = sshll.u32 %s1230_s23, 4  ;;  %s1135_s29 = int_to_ptr.vmem [resolvable:$false] %s1134_s29 }
 0x26f   : > { %s1136_s10 = scalar_lea.vmem %s1135_s29, 512  ;;  %p1137_p13 = scmp.lt.s32.totalorder %s1477_s24, %s1135_s29 }
 0x270   : > { %p1132_p4 = pnand %p1131_p3, %p1311_p9  ;;  %p1138_p12 = scmp.lt.s32.totalorder %s1136_s10, %s1130_s13 }
 0x272   : > { %p1133_p10 = pneg %p1132_p4  ;;  %p1139_p1 = por %p1138_p12, %p1137_p13 }
 0x274   : > { %p1140_p2 = pnand %p1139_p1, %p1133_p10 }
 0x319   : > { %v585_v33 = vpop.f32.mrf.mxu0 }
 0x31a   : > { %662 = vst.msk [vmem:[%s315_s27] sm:$0xff] %vm334_vm1, %v585_v33 }
 0x31b   : > { %v923_v34 = vpop.f32.mrf.mxu0 }
 0x31d   : > { %v658_v35 = vpop.f32.mrf.mxu1 }
 0x31e   : > { %663 = vst.msk [vmem:[%s315_s27 + $0x8] sm:$0xff] %vm334_vm1, %v658_v35 }
 0x31f   : > { %v928_v36 = vpop.f32.mrf.mxu1 }
 0x320   : > { %1143 = shalt.err (!%p1140_p2)
}
 0x321   : > { %s1144_s18 = scalar_lea.hbm %s1484_s11, 256  ;;  %s1148_s12 = scalar_lea.hbm %s1537_s3, 512 }
 0x322   : > { %p1145_p5 = scmp.ne.s32.totalorder %s1484_s11, %s1144_s18  ;;  %p1149_p8 = scmp.lt.s32.totalorder %s1484_s11, %s1537_s3 }
 0x323   : > { %p1150_p0 = scmp.lt.s32.totalorder %s1148_s12, %s1144_s18 }
 0x324   : > { %p1146_p6 = pnand %p1145_p5, %p1311_p9 }
 0x325   : > { %p1151_p3 = por %p1150_p0, %p1149_p8 }
 0x326   : > { %p1147_p7 = pneg %p1146_p6 }
 0x328   : > { %p1152_p4 = pnand %p1151_p3, %p1147_p7 }
 0x32a   : > { %1155 = shalt.err (!%p1152_p4)
}
 0x32b   : > { %935 = dma.vmem_to_hbm [thread:$0]  (%p1311_p9), %s1477_s24, 256, %s1484_s11, %s665_s8, %s1228_s22, %s1228_s22, %s1229_s21  }
 0x32c PF: > { %s716_s14 = sand.u32 1, %s1198_s15   ;;  %p1560_p10 = scmp.ge.s32.totalorder %s1218_s20, 2 }
 0x32d   : > { %s717_s19 = scalar_lea.sflag [#allocation4], %s716_s14 }
 0x32e   : > { %p950_p13 = pnand %p1560_p10, %p1318_p11 }
 0x330   : > { %p951_p12 = pneg %p950_p13 }
 0x332   : > { %1189 = dma.done.wait (%p951_p12), %s717_s19, 256  }
 0x333   : > { %1191 = vsyncadd (%p951_p12), %s717_s19, 4294967040  ;;  %s726_s7 = scalar_lea.sflag [#allocation10], %s716_s14 }
 0x334   : > { %1193 = dma.done.wait (%p951_p12), %s726_s7, 256  }
 0x335   : > { %1195 = vsyncadd (%p951_p12), %s726_s7, 4294967040  ;;  %s27_s20 = sadd.s32 1, %s1218_s20   ;;  %s1561_s28 = sld [smem:[#allocation17_spill]] }
 0x336   : > { %p24_p1 = scmp.ge.s32.totalorder %s27_s20, 4   ;;  %s1562_s18 = sld [smem:[#allocation15_spill]] }
 0x337   : > { %s1563_s19 = sld [smem:[#allocation16_spill]]  ;;  %s1564_s15 = smov %s1202_s16 }
 0x338   : > { %s1565_s16 = smov %s1206_s17  ;;  %26 = sbr.rel (!%p24_p1) target bundleno = 12 (0xc), region = 118 }
 0x33b   : > { %s1566_s17 = smov %s1561_s28 }
 0x33d   :  { %731 = vsyncpa [#allocation3], 1 }
 0x33e   :  { %733 = vsyncpa [#allocation3 + $0x1], 1 }
 0x33f   :  { %734 = vsyncpa [#allocation6], 1 }
 0x340   :  { %736 = vsyncpa [#allocation6 + $0x1], 1 }
 0x341   :  { %737 = vsyncpa [#allocation4], 1 }
 0x342   :  { %739 = vsyncpa [#allocation4 + $0x1], 1 }
 0x343   :  { %740 = vsyncpa [#allocation10], 1 }
 0x344   :  { %742 = vsyncpa [#allocation10 + $0x1], 1 }

</bundles_post_ra>
